<compile_context>
chip_gen: v7x
topology: tpu7x:2x2x1
jax: 0.10.0
libtpu: 0.0.40
codegen_flags: <defaults>
</compile_context>

<pallas_src>
import jax
import jax.numpy as jnp
from jax import lax
from jax.experimental import pallas as pl
from jax.experimental.pallas import tpu as pltpu

INPUT_WINDOW = 101


def ffe_kernel(x_ref, w_ref, b_ref, o_ref):
    # x_ref: (TB, 101) VMEM (native dtype, streamed)
    # w_ref: (1, 101)  VMEM (same dtype, resident across grid steps)
    # b_ref: (1, 1)    f32 SMEM scalar
    # o_ref: (1, TB)   f32 VMEM (lane-dense: unmasked 128-wide stores)
    #
    # NT dot_general (contract dim 1 of both operands) == flash-attention QK^T
    # pattern: lowers to the MXU transposed-RHS path, no XLU transpose of the
    # large x tile.  If a future toolchain regresses this, switch to
    # x @ w_col with a (TB, 1) column store.
    y = lax.dot_general(
        w_ref[...], x_ref[...],
        dimension_numbers=(((1,), (1,)), ((), ())),   # contract the 101-tap dim
        preferred_element_type=jnp.float32,
    )                                                  # -> (1, TB) f32 on the MXU
    o_ref[...] = y + b_ref[0, 0]                       # scalar bias broadcast (VPU)


def _round_up(n, m):
    return ((n + m - 1) // m) * m


def _tile_plan(batch):
    """Rows per grid step, per TPU generation; forces a multi-step grid so
    pipelining (all chips) and megacore sharding (v7x) actually engage."""
    try:
        kind = jax.devices()[0].device_kind.lower()
    except Exception:
        kind = ""
    if "v5" in kind:
        block_rows, min_steps = 16384, 2      # 8 MiB tile; vmem_limit raised below
    elif "v7" in kind:
        block_rows, min_steps = 32768, 4      # 2 TCs; >=4 steps; fits 64 MiB VMEM
    else:                                     # v6e / unknown
        block_rows, min_steps = 16384, 2
    if batch <= 1024:
        return batch                          # tiny problem: single full block
    steps = max(min_steps, pl.cdiv(batch, block_rows))
    # 128-multiple so the lane-dense (1, tb) output block satisfies the lane rule.
    return min(block_rows, _round_up(pl.cdiv(batch, steps), 128))


def ffe_forward(x, weight, bias, *, block_rows=None):
    """x: (B, 101); weight: (1, 101); bias: (1,). Returns (B, 1, 1) like PyTorch."""
    B, K = x.shape
    assert K == INPUT_WINDOW

    # Keep the big streamed operand in its native dtype (no extra HBM convert
    # pass).  bf16 inputs halve DMA bytes and feed the MXU directly with f32
    # accumulation; anything else (f64/int) falls back to a wrapper cast to f32.
    if x.dtype == jnp.bfloat16:
        compute_dtype = jnp.bfloat16
    else:
        compute_dtype = jnp.float32
        if x.dtype != jnp.float32:
            x = x.astype(jnp.float32)
    w_row = weight.reshape(1, INPUT_WINDOW).astype(compute_dtype)
    b_2d = bias.reshape(1, 1).astype(jnp.float32)

    if block_rows is None:
        tb = _tile_plan(B)
    else:
        tb = min(B, int(block_rows))
        if tb < B:
            tb = _round_up(tb, 128)           # lane-dense out-block constraint
    grid = (pl.cdiv(B, tb),)

    itemsize = jnp.dtype(compute_dtype).itemsize
    x_tile_bytes = tb * 128 * itemsize        # 101 -> 128 lane padding in VMEM
    out_tile_bytes = 8 * tb * 4               # 1 -> 8 sublane padding in VMEM
    vmem_limit = 2 * (x_tile_bytes + out_tile_bytes) + (8 << 20)   # double-buffered
    vmem_limit = int(max(32 << 20, min(48 << 20, vmem_limit)))

    out = pl.pallas_call(
        ffe_kernel,
        out_shape=jax.ShapeDtypeStruct((1, B), jnp.float32),
        grid=grid,
        in_specs=[
            pl.BlockSpec((tb, INPUT_WINDOW), lambda i: (i, 0)),          # x tile
            pl.BlockSpec((1, INPUT_WINDOW), lambda i: (0, 0)),           # w (resident)
            pl.BlockSpec(memory_space=pltpu.MemorySpace.SMEM),           # bias scalar
        ],
        out_specs=pl.BlockSpec((1, tb), lambda i: (0, i)),               # lane-dense
        compiler_params=pltpu.CompilerParams(
            dimension_semantics=("parallel",),
            vmem_limit_bytes=vmem_limit,
        ),
        cost_estimate=pl.CostEstimate(
            flops=2 * B * INPUT_WINDOW,
            transcendentals=0,
            bytes_accessed=B * INPUT_WINDOW * itemsize + B * 4 + INPUT_WINDOW * 4 + 4,
        ),
    )(x, w_row, b_2d)

    # Glue: (1, B) -> (B, 1, 1) to mirror unsqueeze(1) + Linear(101, 1).
    return out.reshape(B, 1, 1)


if __name__ == "__main__":
    key = jax.random.PRNGKey(0)
    kx, kw, kb = jax.random.split(key, 3)

    # Deterministic Linear(101, 1) init (PyTorch-style uniform(+-1/sqrt(fan_in))).
    bound = 1.0 / (INPUT_WINDOW ** 0.5)
    weight = jax.random.uniform(kw, (1, INPUT_WINDOW), jnp.float32, -bound, bound)
    bias = jax.random.uniform(kb, (1,), jnp.float32, -bound, bound)

    # Small-batch path (single block).
    B = 8
    x = jax.random.normal(kx, (B, INPUT_WINDOW), dtype=jnp.float32)
    y = jax.block_until_ready(ffe_forward(x, weight, bias))
    ref = (x @ weight.T + bias).reshape(B, 1, 1)
    assert y.shape == (B, 1, 1)
    assert jnp.allclose(y, ref, atol=1e-5), "mismatch vs reference (small batch)"

    # Multi-block path with a partial last tile (exercises batch-grid masking).
    B2 = 300
    x2 = jax.random.normal(kx, (B2, INPUT_WINDOW), dtype=jnp.float32)
    y2 = jax.block_until_ready(ffe_forward(x2, weight, bias, block_rows=128))
    ref2 = (x2 @ weight.T + bias).reshape(B2, 1, 1)
    assert y2.shape == (B2, 1, 1)
    assert jnp.allclose(y2, ref2, atol=1e-5), "mismatch vs reference (tiled batch)"

    # Auto tile plan: multi-step grid engaging pipelining / megacore split.
    B3 = 2048
    x3 = jax.random.normal(kx, (B3, INPUT_WINDOW), dtype=jnp.float32)
    y3 = jax.block_until_ready(ffe_forward(x3, weight, bias))
    ref3 = (x3 @ weight.T + bias).reshape(B3, 1, 1)
    assert y3.shape == (B3, 1, 1)
    assert jnp.allclose(y3, ref3, atol=1e-4), "mismatch vs reference (auto plan)"

    print("KERNEL_OK")
</pallas_src>

<mosaic_0001>
module attributes {stable_mosaic.version = 11 : i64} {
  func.func @ffe_kernel(%arg0: i32, %arg1: memref<8x101xf32, #tpu.memory_space<vmem>>, %arg2: memref<1x101xf32, #tpu.memory_space<vmem>>, %arg3: memref<1x1xf32, #tpu.memory_space<smem>>, %arg4: memref<1x8xf32, #tpu.memory_space<vmem>>) attributes {dimension_semantics = [#tpu.dimension_semantics<parallel>], iteration_bounds = array<i64: 1>, scalar_prefetch = 0 : i64, scratch_operands = 0 : i64, tpu.core_type = #tpu.core_type<tc>, window_params = [{transform_indices = @transform_0, window_bounds = array<i64: 8, 101>}, {pipeline_mode = #tpu.pipeline_mode<synchronous>, transform_indices = @transform_1, window_bounds = array<i64: 1, 101>}, {transform_indices = @transform_2, window_bounds = array<i64: 1, 1>}, {transform_indices = @transform_3, window_bounds = array<i64: 1, 8>}]} {
    %c0 = arith.constant 0 : index
    %c0_0 = arith.constant 0 : index
    %0 = vector.load %arg2[%c0, %c0_0] : memref<1x101xf32, #tpu.memory_space<vmem>>, vector<1x101xf32>
    %c0_1 = arith.constant 0 : index
    %c0_2 = arith.constant 0 : index
    %1 = vector.load %arg1[%c0_1, %c0_2] : memref<8x101xf32, #tpu.memory_space<vmem>>, vector<8x101xf32>
    %cst = arith.constant dense<0.000000e+00> : vector<1x8xf32>
    %2 = tpu.matmul %0, %1, %cst {dimension_numbers = #tpu.dot_dimension_numbers<[1], [1], [0], [0], [0, 0, 1, 0], [], []>} : vector<1x101xf32>, vector<8x101xf32>, vector<1x8xf32> -> vector<1x8xf32>
    %c0_3 = arith.constant 0 : index
    %c0_4 = arith.constant 0 : index
    %3 = memref.load %arg3[%c0_3, %c0_4] : memref<1x1xf32, #tpu.memory_space<smem>>
    %4 = vector.broadcast %3 : f32 to vector<1x8xf32>
    %5 = arith.addf %2, %4 : vector<1x8xf32>
    %c0_5 = arith.constant 0 : index
    %c0_6 = arith.constant 0 : index
    %6 = vector.load %arg4[%c0_5, %c0_6] : memref<1x8xf32, #tpu.memory_space<vmem>>, vector<1x8xf32>
    tpu.vector_store %arg4[%c0_5, %c0_6], %5 {strides = array<i32>} : memref<1x8xf32, #tpu.memory_space<vmem>>, vector<1x8xf32>,
    return
  }
  func.func @transform_0(%arg0: i32) -> (i32, i32) {
    %c0_i32 = arith.constant 0 : i32
    %c0_i32_0 = arith.constant 0 : i32
    return %arg0, %c0_i32 : i32, i32
  }
  func.func @transform_1(%arg0: i32) -> (i32, i32) {
    %c0_i32 = arith.constant 0 : i32
    %c0_i32_0 = arith.constant 0 : i32
    %c0_i32_1 = arith.constant 0 : i32
    return %c0_i32, %c0_i32_0 : i32, i32
  }
  func.func @transform_2(%arg0: i32) -> (i32, i32) {
    %c0_i32 = arith.constant 0 : i32
    %c0_i32_0 = arith.constant 0 : i32
    %c0_i32_1 = arith.constant 0 : i32
    return %c0_i32, %c0_i32_0 : i32, i32
  }
  func.func @transform_3(%arg0: i32) -> (i32, i32) {
    %c0_i32 = arith.constant 0 : i32
    %c0_i32_0 = arith.constant 0 : i32
    return %c0_i32, %arg0 : i32, i32
  }
}

</mosaic_0001>

<bundles_post_ra>
// kernel: tpu_custom_call.1
= control target key start
LH: loop header
LB: loop body
LE: loop exit
PB: predicated region body
PF: predicated region fallthrough
CT: control target
= control target key end

     0   :  { %9 = vsyncpa [#allocation4], 0  ;;  %s241_s0 = inlined_call_operand.hbm [shape: f32[8,101], index: 0, kind: input, shape index: {}]   ;;  %s242_s1 = inlined_call_operand.vmem [shape: f32[1,101], index: 1, kind: input, shape index: {}]   ;;  %s243_s2 = inlined_call_operand.<no memory space> [shape: f32[1,1], index: 2, kind: input, shape index: {}]   ;;  %s244_s3 = inlined_call_operand.hbm [shape: f32[1,8], index: 3, kind: output, shape index: {}]  }
   0x1   :  { %10 = vsyncpa [#allocation5], 0  ;;  %s187_s12 = smov [#allocation3]   ;;  %s139_s16 = scalar_lea.hbm %s241_s0, 128 }
   0x2   :  { %s17_s13 = sshll.u32 %s187_s12, 4  ;;  %p140_p0 = scmp.ne.s32.totalorder %s241_s0, %s139_s16  ;;  %s18_s13 = int_to_ptr.vmem [resolvable:$true] %s17_s13 }
   0x3   :  { %p143_p1 = scmp.lt.u32.totalorder %s139_s16, %s241_s0 }
   0x5   :  { %p145_p2 = pnand %p143_p1, %p140_p0 }
   0x7   :  { %148 = shalt.err (!%p145_p2)
}
   0x8   :  { %s149_s21 = scalar_lea.vmem %s18_s13, 128  ;;  %p154_p4 = scmp.lt.s32.totalorder %s18_s13, %s18_s13 }
   0x9   :  { %p150_p3 = scmp.ne.s32.totalorder %s18_s13, %s149_s21  ;;  %p155_p5 = scmp.lt.s32.totalorder %s149_s21, %s149_s21 }
   0xb   :  { %p156_p6 = por %p155_p5, %p154_p4 }
   0xd   :  { %p157_p7 = pnand %p156_p6, %p150_p3 }
   0xf   :  { %160 = shalt.err (!%p157_p7)
}
  0x10   :  { %20 = dma.hbm_to_vmem [thread:$0]  %s241_s0, 128, %s18_s13, [#allocation4]  }
  0x11   :  { %183 = dma.done.wait [#allocation4], 128  }
  0x12   :  { %184 = vsyncadd [#allocation4], 4294967168  ;;  %v188_v0 = vmov 0.0   ;;  %vm189_vm0 = vmmov 0   ;;  %vm32_vm1 = vcmask 826368   ;;  %v29_v1 = vld [vmem:[#allocation3] sm:$0xff]  ;;  %v31_v3 = vstv %s243_s2 }
  0x13   :  { %130 = vmatprep.subr.mxu0 %v188_v0  ;;  %132 = vmatprep.mubr.msk.f32.mxu0 %vm189_vm0, %v188_v0  ;;  %v28_v2 = vld [vmem:[%s242_s1] sm:$0x1]  ;;  %s190_s28 = smov [#allocation6]   ;;  %vm109_vm2 = vcmask 57344  }
  0x14   :  { %131 = vmatpush3.xpose.msk.msra.mxu0 %vm32_vm1, %v29_v1  ;;  %s117_s0 = sshll.u32 %s190_s28, 4  ;;  %s118_s0 = int_to_ptr.vmem [resolvable:$true] %s117_s0 }
  0x15   :  { %s161_s29 = scalar_lea.vmem %s118_s0, 16  ;;  %s165_s30 = scalar_lea.vmem %s118_s0, 32 }
  0x16   :  { %p162_p8 = scmp.ne.s32.totalorder %s118_s0, %s161_s29  ;;  %p166_p9 = scmp.lt.s32.totalorder %s118_s0, %s118_s0 }
  0x17   :  { %133 = vmatmul.mubr.msk.f32.vlgmr.msra.gmra.mrb[0].mxu0 %vm32_vm1, %v28_v2  ;;  %p167_p10 = scmp.lt.s32.totalorder %s165_s30, %s161_s29 }
  0x19   :  { %p168_p11 = por %p167_p10, %p166_p9 }
  0x1b   :  { %p169_p12 = pnand %p168_p11, %p162_p8 }
  0xea   :  { %v105_v4 = vpop.f32.mrb[0].mxu0 }
  0xeb   :  { %v106_v5 = vadd.f32 %v105_v4, %v31_v3  ;;  %v134_v6 = vpop.f32.mrb[1].mxu0 }
  0xed   :  { %110 = vst.msk [vmem:[#allocation6] sm:$0x1] %vm109_vm2, %v106_v5 }
  0xee   :  { %172 = shalt.err (!%p169_p12)
}
  0xef   :  { %s173_s2 = scalar_lea.hbm %s244_s3, 16 }
  0xf0   :  { %p174_p13 = scmp.ne.s32.totalorder %s244_s3, %s173_s2  ;;  %p177_p0 = scmp.lt.u32.totalorder %s173_s2, %s244_s3 }
  0xf2   :  { %p179_p1 = pnand %p177_p0, %p174_p13 }
  0xf4   :  { %182 = shalt.err (!%p179_p1)
}
  0xf5   :  { %120 = dma.vmem_to_hbm [thread:$0]  %s118_s0, 16, %s244_s3, [#allocation5]  }
  0xf6   :  { %185 = dma.done.wait [#allocation5], 16  }
  0xf7   :  { %186 = vsyncadd [#allocation5], 4294967280 }
  0xf8   :  { %124 = vsyncpa [#allocation4], 1 }
  0xf9   :  { %125 = vsyncpa [#allocation5], 1 }

</bundles_post_ra>
